<compile_context>
chip_gen: v7x
topology: tpu7x:2x2x1
jax: 0.10.0
libtpu: 0.0.40
codegen_flags: <defaults>
</compile_context>

<pallas_src>
import functools

import jax
import jax.numpy as jnp
from jax import lax
from jax.experimental import pallas as pl
from jax.experimental.pallas import tpu as pltpu

LANE = 128


def _round_up(n, m):
    return ((n + m - 1) // m) * m


def _pick_thw(hw, fp, tb, cin, budget_bytes=16 * 1024 * 1024):
    """Largest legal spatial tile (multiple of 128, or the full HW extent) whose
    feat intermediate + double-buffered x tile fits a conservative VMEM budget."""
    def cost(t):
        return t * fp * 4 + 2 * tb * cin * t * 4
    if cost(hw) <= budget_bytes:
        return hw                      # single spatial step (ns == 1) is fine
    for cand in (8192, 4096, 2048, 1024, 512, 256, 128):
        if hw % cand == 0 and cost(cand) <= budget_bytes:
            return cand
    return hw                          # fallback: full-extent block (always legal)


def _custom_model_kernel(
    x_ref,      # (TB, Cin, THW)  f32   input tile (batch block, spatial chunk)
    wconv_ref,  # (Cin, Fp)       bf16  backbone stand-in 1x1 conv weight
    bconv_ref,  # (1, Fp)         f32
    wemb_ref,   # (Fp, Ep)        bf16  embedding_layer weight (in, out)
    bemb_ref,   # (1, Ep)         f32
    wcls_ref,   # (Ep, Cp)        bf16  classifier weight (in, out)
    bcls_ref,   # (1, Cp)         f32
    emb_ref,    # (TB, Ep)        f32   output: embedding
    out_ref,    # (TB, Cp)        f32   output: logits
    acc_ref,    # (TB, Fp)        f32   VMEM scratch: running pooled sums
    *,
    inv_hw,     # python float: 1 / (H*W)
    tb,         # python int: batch tile
):
    s = pl.program_id(1)
    ns = pl.num_programs(1)

    # --- init pooled-sum accumulator at the start of each batch block -----------
    @pl.when(s == 0)
    def _init():
        acc_ref[...] = jnp.zeros_like(acc_ref)

    wconv = wconv_ref[...]
    bconv = bconv_ref[...]

    # --- backbone stand-in: pointwise conv (1x1) + ReLU on this spatial chunk ---
    # Small static loop over the batch tile (tb <= 8).
    sums = []
    for b in range(tb):
        xb = x_ref[b].astype(jnp.bfloat16)                     # (Cin, THW), cast in-kernel
        # (THW, Fp) = xb^T @ wconv without materializing the transpose.
        feat = lax.dot_general(
            xb, wconv,
            dimension_numbers=(((0,), (0,)), ((), ())),
            preferred_element_type=jnp.float32)                 # (THW, Fp) f32
        feat = jnp.maximum(feat + bconv, 0.0)                   # bias before ReLU
        # TODO(synk): if VALU ever binds, replace this VPU reduce with an MXU
        # ones-row matmul (jnp.dot(ones((1, THW)), feat)).
        sums.append(jnp.sum(feat, axis=0, keepdims=True))       # (1, Fp)

    # --- streamed global average pool: accumulate the spatial sums --------------
    acc_ref[...] += jnp.concatenate(sums, axis=0)               # (TB, Fp)

    # --- finalize: mean, embedding Linear, classifier Linear, store -------------
    @pl.when(s == ns - 1)
    def _finalize():
        pooled = acc_ref[...] * inv_hw                                          # (TB, Fp)
        emb = jnp.dot(pooled.astype(jnp.bfloat16), wemb_ref[...],
                      preferred_element_type=jnp.float32) + bemb_ref[...]       # (TB, Ep)
        out = jnp.dot(emb.astype(jnp.bfloat16), wcls_ref[...],
                      preferred_element_type=jnp.float32) + bcls_ref[...]       # (TB, Cp)
        emb_ref[...] = emb.astype(emb_ref.dtype)
        out_ref[...] = out.astype(out_ref.dtype)


@jax.jit
def custom_model_forward(x_nchw, params):
    """x_nchw: [B, Cin, H, W] float32. Returns (embedding [B, E], out [B, C])."""
    B, Cin, H, W = x_nchw.shape
    HW = H * W
    wconv, bconv = params["wconv"], params["bconv"]   # (Cin, F), (1, F)
    wemb, bemb = params["wemb"], params["bemb"]       # (F, E),  (1, E)
    wcls, bcls = params["wcls"], params["bcls"]       # (E, C),  (1, C)
    F, E, C = wconv.shape[1], wemb.shape[1], wcls.shape[1]

    Fp = _round_up(F, LANE)
    Ep = _round_up(E, LANE)
    Cp = _round_up(C, LANE)

    # Batch blocking: TB == B (<= 8) keeps the output block legal (block dim == array
    # dim); for larger B use TB=8 with the batch zero-padded to a multiple of 8.
    if B <= 8:
        TB, Bp = B, B
    else:
        TB = 8
        Bp = _round_up(B, TB)

    thw = _pick_thw(HW, Fp, TB, Cin)
    ns = HW // thw

    # ---- input: NCHW -> (B, Cin, HW). Pure reshape, no pad, no dtype copy. ------
    x = x_nchw.reshape(B, Cin, HW)
    if Bp != B:
        x = jnp.pad(x, ((0, Bp - B), (0, 0), (0, 0)))

    # ---- lane-dense, zero-padded parameters (padding is mathematically inert) ----
    f32 = jnp.float32
    wconv_p = jnp.zeros((Cin, Fp), f32).at[:, :F].set(wconv).astype(jnp.bfloat16)
    bconv_p = jnp.zeros((1, Fp), f32).at[:, :F].set(bconv.reshape(1, F))
    wemb_p = jnp.zeros((Fp, Ep), f32).at[:F, :E].set(wemb).astype(jnp.bfloat16)
    bemb_p = jnp.zeros((1, Ep), f32).at[:, :E].set(bemb.reshape(1, E))
    wcls_p = jnp.zeros((Ep, Cp), f32).at[:E, :C].set(wcls).astype(jnp.bfloat16)
    bcls_p = jnp.zeros((1, Cp), f32).at[:, :C].set(bcls.reshape(1, C))

    kernel = functools.partial(_custom_model_kernel, inv_hw=1.0 / float(HW), tb=TB)

    emb_p, out_p = pl.pallas_call(
        kernel,
        out_shape=(
            jax.ShapeDtypeStruct((Bp, Ep), f32),
            jax.ShapeDtypeStruct((Bp, Cp), f32),
        ),
        grid=(Bp // TB, ns),
        in_specs=[
            pl.BlockSpec((TB, Cin, thw), lambda b, s: (b, 0, s)),
            pl.BlockSpec((Cin, Fp), lambda b, s: (0, 0)),
            pl.BlockSpec((1, Fp), lambda b, s: (0, 0)),
            pl.BlockSpec((Fp, Ep), lambda b, s: (0, 0)),
            pl.BlockSpec((1, Ep), lambda b, s: (0, 0)),
            pl.BlockSpec((Ep, Cp), lambda b, s: (0, 0)),
            pl.BlockSpec((1, Cp), lambda b, s: (0, 0)),
        ],
        out_specs=(
            pl.BlockSpec((TB, Ep), lambda b, s: (b, 0)),
            pl.BlockSpec((TB, Cp), lambda b, s: (b, 0)),
        ),
        scratch_shapes=[pltpu.VMEM((TB, Fp), jnp.float32)],
        compiler_params=pltpu.CompilerParams(
            dimension_semantics=("parallel", "arbitrary"),
            vmem_limit_bytes=32 * 1024 * 1024,
        ),
    )(x, wconv_p, bconv_p, wemb_p, bemb_p, wcls_p, bcls_p)

    return emb_p[:B, :E], out_p[:B, :C]


def init_params(key, cin, num_features, embedding_size, num_classes):
    ks = jax.random.split(key, 6)
    scale = 0.1
    return {
        "wconv": scale * jax.random.normal(ks[0], (cin, num_features), jnp.float32),
        "bconv": scale * jax.random.normal(ks[1], (1, num_features), jnp.float32),
        "wemb": scale * jax.random.normal(ks[2], (num_features, embedding_size), jnp.float32),
        "bemb": scale * jax.random.normal(ks[3], (1, embedding_size), jnp.float32),
        "wcls": scale * jax.random.normal(ks[4], (embedding_size, num_classes), jnp.float32),
        "bcls": scale * jax.random.normal(ks[5], (1, num_classes), jnp.float32),
    }


def reference_forward(x_nchw, params):
    """Pure-JAX reference with identical semantics (bf16 matmul operands, f32 accumulation)."""
    B, Cin, H, W = x_nchw.shape
    x = x_nchw.reshape(B, Cin, H * W)

    def bf(a):
        return a.astype(jnp.bfloat16).astype(jnp.float32)

    feat = jnp.einsum("bcs,cf->bsf", bf(x), bf(params["wconv"])) + params["bconv"]  # (B, HW, F)
    feat = jnp.maximum(feat, 0.0)
    pooled = jnp.mean(feat, axis=1)                                                  # (B, F)
    emb = bf(pooled) @ bf(params["wemb"]) + params["bemb"]
    out = bf(emb) @ bf(params["wcls"]) + params["bcls"]
    return emb, out


if __name__ == "__main__":
    # Small shapes consistent with the module's forward pass.
    B, Cin, H, W = 2, 4, 16, 16
    num_features, embedding_size, num_classes = 32, 32, 8

    key = jax.random.PRNGKey(0)
    kx, kp = jax.random.split(key)
    x = jax.random.normal(kx, (B, Cin, H, W), jnp.float32)
    params = init_params(kp, Cin, num_features, embedding_size, num_classes)

    emb, out = custom_model_forward(x, params)
    jax.block_until_ready((emb, out))

    emb_ref, out_ref = reference_forward(x, params)
    assert emb.shape == (B, embedding_size) and out.shape == (B, num_classes)
    assert jnp.allclose(emb, emb_ref, atol=5e-3, rtol=5e-3)
    assert jnp.allclose(out, out_ref, atol=5e-3, rtol=5e-3)

    print("KERNEL_OK")
</pallas_src>

<mosaic_0001>
module attributes {stable_mosaic.version = 11 : i64} {
  func.func @_custom_model_kernel(%arg0: i32, %arg1: i32, %arg2: memref<2x4x256xf32, #tpu.memory_space<vmem>>, %arg3: memref<4x128xbf16, #tpu.memory_space<vmem>>, %arg4: memref<1x128xf32, #tpu.memory_space<vmem>>, %arg5: memref<128x128xbf16, #tpu.memory_space<vmem>>, %arg6: memref<1x128xf32, #tpu.memory_space<vmem>>, %arg7: memref<128x128xbf16, #tpu.memory_space<vmem>>, %arg8: memref<1x128xf32, #tpu.memory_space<vmem>>, %arg9: memref<2x128xf32, #tpu.memory_space<vmem>>, %arg10: memref<2x128xf32, #tpu.memory_space<vmem>>, %arg11: memref<2x128xf32, #tpu.memory_space<vmem>>) attributes {dimension_semantics = [#tpu.dimension_semantics<parallel>, #tpu.dimension_semantics<arbitrary>], iteration_bounds = array<i64: 1, 1>, scalar_prefetch = 0 : i64, scratch_operands = 1 : i64, tpu.core_type = #tpu.core_type<tc>, window_params = [{transform_indices = @transform_0, window_bounds = array<i64: 2, 4, 256>}, {pipeline_mode = #tpu.pipeline_mode<synchronous>, transform_indices = @transform_1, window_bounds = array<i64: 4, 128>}, {pipeline_mode = #tpu.pipeline_mode<synchronous>, transform_indices = @transform_2, window_bounds = array<i64: 1, 128>}, {pipeline_mode = #tpu.pipeline_mode<synchronous>, transform_indices = @transform_3, window_bounds = array<i64: 128, 128>}, {pipeline_mode = #tpu.pipeline_mode<synchronous>, transform_indices = @transform_4, window_bounds = array<i64: 1, 128>}, {pipeline_mode = #tpu.pipeline_mode<synchronous>, transform_indices = @transform_5, window_bounds = array<i64: 128, 128>}, {pipeline_mode = #tpu.pipeline_mode<synchronous>, transform_indices = @transform_6, window_bounds = array<i64: 1, 128>}, {transform_indices = @transform_7, window_bounds = array<i64: 2, 128>}, {transform_indices = @transform_8, window_bounds = array<i64: 2, 128>}]} {
    %c0_i32 = arith.constant 0 : i32
    %0 = arith.cmpi eq, %arg1, %c0_i32 : i32
    %1 = arith.extui %0 : i1 to i32
    %c0_i32_0 = arith.constant 0 : i32
    %2 = arith.cmpi ne, %1, %c0_i32_0 : i32
    scf.if %2 {
      %cst_20 = arith.constant 0.000000e+00 : f32
      %32 = vector.broadcast %cst_20 : f32 to vector<2x128xf32>
      %c0_21 = arith.constant 0 : index
      %c0_22 = arith.constant 0 : index
      %33 = vector.load %arg11[%c0_21, %c0_22] : memref<2x128xf32, #tpu.memory_space<vmem>>, vector<2x128xf32>
      tpu.vector_store %arg11[%c0_21, %c0_22], %32 {strides = array<i32>} : memref<2x128xf32, #tpu.memory_space<vmem>>, vector<2x128xf32>,
    } else {
    }
    %c0 = arith.constant 0 : index
    %c0_1 = arith.constant 0 : index
    %3 = vector.load %arg3[%c0, %c0_1] : memref<4x128xbf16, #tpu.memory_space<vmem>>, vector<4x128xbf16>
    %c0_2 = arith.constant 0 : index
    %c0_3 = arith.constant 0 : index
    %4 = vector.load %arg4[%c0_2, %c0_3] : memref<1x128xf32, #tpu.memory_space<vmem>>, vector<1x128xf32>
    %c0_4 = arith.constant 0 : index
    %c0_5 = arith.constant 0 : index
    %c0_6 = arith.constant 0 : index
    %5 = vector.load %arg2[%c0_4, %c0_5, %c0_6] : memref<2x4x256xf32, #tpu.memory_space<vmem>>, vector<1x4x256xf32>
    %6 = vector.shape_cast %5 : vector<1x4x256xf32> to vector<4x256xf32>
    %7 = arith.truncf %6 : vector<4x256xf32> to vector<4x256xbf16>
    %cst = arith.constant dense<0.000000e+00> : vector<256x128xf32>
    %8 = tpu.matmul %7, %3, %cst {dimension_numbers = #tpu.dot_dimension_numbers<[0], [0], [1], [1], [0, 1, 1, 1], [], []>} : vector<4x256xbf16>, vector<4x128xbf16>, vector<256x128xf32> -> vector<256x128xf32>
    %9 = vector.broadcast %4 : vector<1x128xf32> to vector<256x128xf32>
    %10 = arith.addf %8, %9 : vector<256x128xf32>
    %cst_7 = arith.constant 0.000000e+00 : f32
    %11 = vector.broadcast %cst_7 : f32 to vector<256x128xf32>
    %12 = arith.maximumf %10, %11 : vector<256x128xf32>
    %cst_8 = arith.constant dense<0.000000e+00> : vector<128xf32>
    %13 = vector.multi_reduction <add>, %12, %cst_8 [0] : vector<256x128xf32> to vector<128xf32>
    %14 = vector.shape_cast %13 : vector<128xf32> to vector<1x128xf32>
    %c1 = arith.constant 1 : index
    %c0_9 = arith.constant 0 : index
    %c0_10 = arith.constant 0 : index
    %15 = vector.load %arg2[%c1, %c0_9, %c0_10] : memref<2x4x256xf32, #tpu.memory_space<vmem>>, vector<1x4x256xf32>
    %16 = vector.shape_cast %15 : vector<1x4x256xf32> to vector<4x256xf32>
    %17 = arith.truncf %16 : vector<4x256xf32> to vector<4x256xbf16>
    %cst_11 = arith.constant dense<0.000000e+00> : vector<256x128xf32>
    %18 = tpu.matmul %17, %3, %cst_11 {dimension_numbers = #tpu.dot_dimension_numbers<[0], [0], [1], [1], [0, 1, 1, 1], [], []>} : vector<4x256xbf16>, vector<4x128xbf16>, vector<256x128xf32> -> vector<256x128xf32>
    %19 = vector.broadcast %4 : vector<1x128xf32> to vector<256x128xf32>
    %20 = arith.addf %18, %19 : vector<256x128xf32>
    %cst_12 = arith.constant 0.000000e+00 : f32
    %21 = vector.broadcast %cst_12 : f32 to vector<256x128xf32>
    %22 = arith.maximumf %20, %21 : vector<256x128xf32>
    %cst_13 = arith.constant dense<0.000000e+00> : vector<128xf32>
    %23 = vector.multi_reduction <add>, %22, %cst_13 [0] : vector<256x128xf32> to vector<128xf32>
    %24 = vector.shape_cast %23 : vector<128xf32> to vector<1x128xf32>
    %c0_14 = arith.constant 0 : index
    %c0_15 = arith.constant 0 : index
    %25 = vector.load %arg11[%c0_14, %c0_15] : memref<2x128xf32, #tpu.memory_space<vmem>>, vector<2x128xf32>
    %26 = tpu.concatenate %14, %24 in 0 : vector<1x128xf32>, vector<1x128xf32> -> vector<2x128xf32>
    %27 = arith.addf %25, %26 : vector<2x128xf32>
    %c0_16 = arith.constant 0 : index
    %c0_17 = arith.constant 0 : index
    %28 = vector.load %arg11[%c0_16, %c0_17] : memref<2x128xf32, #tpu.memory_space<vmem>>, vector<2x128xf32>
    tpu.vector_store %arg11[%c0_16, %c0_17], %27 {strides = array<i32>} : memref<2x128xf32, #tpu.memory_space<vmem>>, vector<2x128xf32>,
    %c0_i32_18 = arith.constant 0 : i32
    %29 = arith.cmpi eq, %arg1, %c0_i32_18 : i32
    %30 = arith.extui %29 : i1 to i32
    %c0_i32_19 = arith.constant 0 : i32
    %31 = arith.cmpi ne, %30, %c0_i32_19 : i32
    scf.if %31 {
      %c0_20 = arith.constant 0 : index
      %c0_21 = arith.constant 0 : index
      %32 = vector.load %arg11[%c0_20, %c0_21] : memref<2x128xf32, #tpu.memory_space<vmem>>, vector<2x128xf32>
      %cst_22 = arith.constant 3.906250e-03 : f32
      %33 = vector.broadcast %cst_22 : f32 to vector<2x128xf32>
      %34 = arith.mulf %32, %33 : vector<2x128xf32>
      %35 = arith.truncf %34 : vector<2x128xf32> to vector<2x128xbf16>
      %c0_23 = arith.constant 0 : index
      %c0_24 = arith.constant 0 : index
      %36 = vector.load %arg5[%c0_23, %c0_24] : memref<128x128xbf16, #tpu.memory_space<vmem>>, vector<128x128xbf16>
      %cst_25 = arith.constant dense<0.000000e+00> : vector<2x128xf32>
      %37 = tpu.matmul %35, %36, %cst_25 {dimension_numbers = #tpu.dot_dimension_numbers<[1], [0], [0], [1], [0, 0, 1, 1], [], []>} : vector<2x128xbf16>, vector<128x128xbf16>, vector<2x128xf32> -> vector<2x128xf32>
      %c0_26 = arith.constant 0 : index
      %c0_27 = arith.constant 0 : index
      %38 = vector.load %arg6[%c0_26, %c0_27] : memref<1x128xf32, #tpu.memory_space<vmem>>, vector<1x128xf32>
      %39 = vector.broadcast %38 : vector<1x128xf32> to vector<2x128xf32>
      %40 = arith.addf %37, %39 : vector<2x128xf32>
      %41 = arith.truncf %40 : vector<2x128xf32> to vector<2x128xbf16>
      %c0_28 = arith.constant 0 : index
      %c0_29 = arith.constant 0 : index
      %42 = vector.load %arg7[%c0_28, %c0_29] : memref<128x128xbf16, #tpu.memory_space<vmem>>, vector<128x128xbf16>
      %cst_30 = arith.constant dense<0.000000e+00> : vector<2x128xf32>
      %43 = tpu.matmul %41, %42, %cst_30 {dimension_numbers = #tpu.dot_dimension_numbers<[1], [0], [0], [1], [0, 0, 1, 1], [], []>} : vector<2x128xbf16>, vector<128x128xbf16>, vector<2x128xf32> -> vector<2x128xf32>
      %c0_31 = arith.constant 0 : index
      %c0_32 = arith.constant 0 : index
      %44 = vector.load %arg8[%c0_31, %c0_32] : memref<1x128xf32, #tpu.memory_space<vmem>>, vector<1x128xf32>
      %45 = vector.broadcast %44 : vector<1x128xf32> to vector<2x128xf32>
      %46 = arith.addf %43, %45 : vector<2x128xf32>
      %c0_33 = arith.constant 0 : index
      %c0_34 = arith.constant 0 : index
      %47 = vector.load %arg9[%c0_33, %c0_34] : memref<2x128xf32, #tpu.memory_space<vmem>>, vector<2x128xf32>
      tpu.vector_store %arg9[%c0_33, %c0_34], %40 {strides = array<i32>} : memref<2x128xf32, #tpu.memory_space<vmem>>, vector<2x128xf32>,
      %c0_35 = arith.constant 0 : index
      %c0_36 = arith.constant 0 : index
      %48 = vector.load %arg10[%c0_35, %c0_36] : memref<2x128xf32, #tpu.memory_space<vmem>>, vector<2x128xf32>
      tpu.vector_store %arg10[%c0_35, %c0_36], %46 {strides = array<i32>} : memref<2x128xf32, #tpu.memory_space<vmem>>, vector<2x128xf32>,
    } else {
    }
    return
  }
  func.func @transform_0(%arg0: i32, %arg1: i32) -> (i32, i32, i32) {
    %c0_i32 = arith.constant 0 : i32
    %c0_i32_0 = arith.constant 0 : i32
    return %arg0, %c0_i32, %arg1 : i32, i32, i32
  }
  func.func @transform_1(%arg0: i32, %arg1: i32) -> (i32, i32) {
    %c0_i32 = arith.constant 0 : i32
    %c0_i32_0 = arith.constant 0 : i32
    %c0_i32_1 = arith.constant 0 : i32
    return %c0_i32, %c0_i32_0 : i32, i32
  }
  func.func @transform_2(%arg0: i32, %arg1: i32) -> (i32, i32) {
    %c0_i32 = arith.constant 0 : i32
    %c0_i32_0 = arith.constant 0 : i32
    %c0_i32_1 = arith.constant 0 : i32
    return %c0_i32, %c0_i32_0 : i32, i32
  }
  func.func @transform_3(%arg0: i32, %arg1: i32) -> (i32, i32) {
    %c0_i32 = arith.constant 0 : i32
    %c0_i32_0 = arith.constant 0 : i32
    %c0_i32_1 = arith.constant 0 : i32
    return %c0_i32, %c0_i32_0 : i32, i32
  }
  func.func @transform_4(%arg0: i32, %arg1: i32) -> (i32, i32) {
    %c0_i32 = arith.constant 0 : i32
    %c0_i32_0 = arith.constant 0 : i32
    %c0_i32_1 = arith.constant 0 : i32
    return %c0_i32, %c0_i32_0 : i32, i32
  }
  func.func @transform_5(%arg0: i32, %arg1: i32) -> (i32, i32) {
    %c0_i32 = arith.constant 0 : i32
    %c0_i32_0 = arith.constant 0 : i32
    %c0_i32_1 = arith.constant 0 : i32
    return %c0_i32, %c0_i32_0 : i32, i32
  }
  func.func @transform_6(%arg0: i32, %arg1: i32) -> (i32, i32) {
    %c0_i32 = arith.constant 0 : i32
    %c0_i32_0 = arith.constant 0 : i32
    %c0_i32_1 = arith.constant 0 : i32
    return %c0_i32, %c0_i32_0 : i32, i32
  }
  func.func @transform_7(%arg0: i32, %arg1: i32) -> (i32, i32) {
    %c0_i32 = arith.constant 0 : i32
    %c0_i32_0 = arith.constant 0 : i32
    return %arg0, %c0_i32 : i32, i32
  }
  func.func @transform_8(%arg0: i32, %arg1: i32) -> (i32, i32) {
    %c0_i32 = arith.constant 0 : i32
    %c0_i32_0 = arith.constant 0 : i32
    return %arg0, %c0_i32 : i32, i32
  }
}

</mosaic_0001>

<bundles_post_ra>
// kernel: custom_model_forward.1
= control target key start
LH: loop header
LB: loop body
LE: loop exit
PB: predicated region body
PF: predicated region fallthrough
CT: control target
= control target key end

     0   :  { %14 = vsyncpa [#allocation4], 0  ;;  %vm131_vm0 = vcmask 1041408   ;;  %s1487_s0 = inlined_call_operand.vmem [shape: f32[2,4,256], index: 0, kind: input, shape index: {}]   ;;  %s1488_s1 = inlined_call_operand.vmem [shape: bf16[4,128], index: 1, kind: input, shape index: {}]   ;;  %s1489_s2 = inlined_call_operand.vmem [shape: f32[1,128], index: 2, kind: input, shape index: {}]   ;;  %s1490_s3 = inlined_call_operand.vmem [shape: bf16[128,128], index: 3, kind: input, shape index: {}]   ;;  %s1491_s4 = inlined_call_operand.vmem [shape: f32[1,128], index: 4, kind: input, shape index: {}]   ;;  %s1492_s5 = inlined_call_operand.vmem [shape: bf16[128,128], index: 5, kind: input, shape index: {}]   ;;  %s1493_s6 = inlined_call_operand.vmem [shape: f32[1,128], index: 6, kind: input, shape index: {}]   ;;  %s1494_s7 = inlined_call_operand.hbm [shape: f32[2,128], index: 7, kind: output, shape index: {0}]   ;;  %s1495_s8 = inlined_call_operand.hbm [shape: f32[2,128], index: 8, kind: output, shape index: {1}]  }
   0x1   :  { %v38_v0 = vld [vmem:[%s1487_s0] sm:$0xff] }
   0x2   :  { %v36_v1 = vld [vmem:[%s1488_s1] sm:$0x3]  ;;  %v42_v2 = vpack.c.bf16 %v38_v0, %v38_v0  ;;  %v40_v3 = vcombine.high %v38_v0, %v38_v0 }
   0x3   :  { %1158 = vmatprep.subr.msk.bf16.mxu0 %vm131_vm0, %v36_v1  ;;  %v133_v4 = vsel %vm131_vm0, %v36_v1, 0  ;;  %1159 = vmatprep.subr.msk.bf16.mxu1 %vm131_vm0, %v36_v1 }
   0x4   :  { %50 = vxpose.xlu0.c.b16.start.end [1/1] (short) %v42_v2, 128  ;;  %v43_v5 = vpack.c.bf16 %v40_v3, %v40_v3  ;;  %1051 = vmatpush3.bf16.msra.mxu0 %v133_v4 }
   0x5   :  { %1085 = vmatpush3.bf16.msra.mxu1 %v133_v4 }
   0x6   :  { %66 = vxpose.xlu1.c.b16.start.end [1/1] (short) %v43_v5, 128 }
   0x7   :  { %15 = vsyncpa [#allocation6], 0  ;;  %v963_v6 = vld [vmem:[%s1487_s0 + $0x8] sm:$0xff]  ;;  %vm82_vm1 = vcmask 31744   ;;  %v1167_v42 = vld [vmem:[%s1490_s3] sm:$0xff]   ;;  %v1231_v43 = vmov 0.0  }
   0x8   :  { %v368_v7 = vcombine.high %v963_v6, %v963_v6  ;;  %v370_v8 = vpack.c.bf16 %v963_v6, %v963_v6  ;;  %1118 = vmatprep.subr.bf16.mxu0 %v1231_v43  ;;  %35 = vst [vmem:[#allocation2] sm:$0x3] %v1231_v43  ;;  %1138 = vmatprep.subr.bf16.mxu1 %v1231_v43  ;;  %v1168_v44 = vld [vmem:[%s1490_s3 + $0x8] sm:$0xff]   ;;  %v1169_v45 = vld [vmem:[%s1490_s3 + $0x10] sm:$0xff]   ;;  %v1170_v46 = vld [vmem:[%s1490_s3 + $0x18] sm:$0xff]   ;;  %vm1232_vm2 = vmmov 0  }
   0x9   :  { %v1171_v47 = vld [vmem:[%s1490_s3 + $0x20] sm:$0xff]   ;;  %v1172_v48 = vld [vmem:[%s1490_s3 + $0x28] sm:$0xff]   ;;  %v1173_v49 = vld [vmem:[%s1490_s3 + $0x30] sm:$0xff]   ;;  %vm683_vm3 = vcmask 1040384   ;;  %s1233_s18 = smov [#allocation3]  }
   0xa   :  { %v371_v9 = vpack.c.bf16 %v368_v7, %v368_v7  ;;  %v1174_v50 = vld [vmem:[%s1490_s3 + $0x38] sm:$0xff]   ;;  %v1360_v51 = vld [vmem:[%s1489_s2] ss:$0 sm:$0xff]  ;;  %v1176_v60 = vld [vmem:[%s1492_s5 + $0x8] sm:$0xff]   ;;  %s924_s19 = sshll.u32 %s1233_s18, 4  ;;  %s925_s19 = int_to_ptr.vmem [resolvable:$true] %s924_s19 }
   0xb   :  { %v1175_v56 = vld [vmem:[%s1492_s5] sm:$0xff]   ;;  %v1177_v3 = vld [vmem:[%s1492_s5 + $0x10] sm:$0xff]   ;;  %s1183_s20 = scalar_lea.vmem %s925_s19, 32  ;;  %p1188_p1 = scmp.lt.s32.totalorder %s925_s19, %s925_s19 }
   0xc   :  { %p1184_p0 = scmp.ne.s32.totalorder %s925_s19, %s1183_s20  ;;  %p1189_p2 = scmp.lt.s32.totalorder %s1183_s20, %s1183_s20 }
   0xe   :  { %p1190_p3 = por %p1189_p2, %p1188_p1 }
  0x10   :  { %p1191_p4 = pnand %p1190_p3, %p1184_p0 }
  0x21   :  { %372 = vxpose.xlu0.c.b16.start.end [1/1] (short) %v370_v8, 128 }
  0x23   :  { %388 = vxpose.xlu1.c.b16.start.end [1/1] (short) %v371_v9, 128 }
  0x6a   :  { %v58_v10 = vpop.trf.xlu0 }
  0x6b   :  { %1052 = vmatprep.mubr.msk.bf16.mxu0 %vm82_vm1, %v58_v10 }
  0x6c   :  { %v74_v11 = vpop.trf.xlu1 }
  0x6e   :  { %v59_v12 = vpop.trf.xlu0 }
  0x6f   :  { %1053 = vmatmul.mubr.msk.bf16.vlgmr.msra.gmra.mrb[0].mxu0 %vm82_vm1, %v59_v12 }
  0x70   :  { %v75_v13 = vpop.trf.xlu1  ;;  %1119 = vmatpush3.bf16.msra.mxu0 %v1167_v42 }
  0x71   :  { %1120 = vmatprep.subr.bf16.mxu0 %v1231_v43 }
  0x72   :  { %v60_v14 = vpop.trf.xlu0 }
  0x73   :  { %1056 = vmatprep.mubr.msk.bf16.mxu0 %vm82_vm1, %v60_v14  ;;  %v1178_v14 = vld [vmem:[%s1492_s5 + $0x18] sm:$0xff]  }
  0x74   :  { %v76_v15 = vpop.trf.xlu1  ;;  %1121 = vmatpush3.bf16.msra.mxu0 %v1168_v44 }
  0x75   :  { %1122 = vmatprep.subr.bf16.mxu0 %v1231_v43 }
  0x76   :  { %v61_v16 = vpop.trf.xlu0 }
  0x77   :  { %1057 = vmatmul.mubr.msk.bf16.gmra.mrb[4].mxu0 %vm82_vm1, %v61_v16 }
  0x78   :  { %v77_v18 = vpop.trf.xlu1  ;;  %1123 = vmatpush3.bf16.msra.mxu0 %v1169_v45 }
  0x79   :  { %1124 = vmatprep.subr.bf16.mxu0 %v1231_v43 }
  0x7a   :  { %v62_v17 = vpop.trf.xlu0 }
  0x7b   :  { %1060 = vmatprep.mubr.msk.bf16.mxu0 %vm82_vm1, %v62_v17 }
  0x7c   :  { %v78_v20 = vpop.trf.xlu1  ;;  %1125 = vmatpush3.bf16.msra.mxu0 %v1170_v46 }
  0x7d   :  { %1126 = vmatprep.subr.bf16.mxu0 %v1231_v43 }
  0x7e   :  { %v63_v19 = vpop.trf.xlu0 }
  0x7f   :  { %1061 = vmatmul.mubr.msk.bf16.gmra.mrb[8].mxu0 %vm82_vm1, %v63_v19 }
  0x80   :  { %v79_v23 = vpop.trf.xlu1  ;;  %1127 = vmatpush3.bf16.msra.mxu0 %v1171_v47 }
  0x81   :  { %1128 = vmatprep.subr.bf16.mxu0 %v1231_v43 }
  0x82   :  { %v64_v21 = vpop.trf.xlu0 }
  0x83   :  { %1064 = vmatprep.mubr.msk.bf16.mxu0 %vm82_vm1, %v64_v21  ;;  %v1179_v21 = vld [vmem:[%s1492_s5 + $0x20] sm:$0xff]  }
  0x84   :  { %v80_v25 = vpop.trf.xlu1  ;;  %1129 = vmatpush3.bf16.msra.mxu0 %v1172_v48 }
  0x85   :  { %1130 = vmatprep.subr.bf16.mxu0 %v1231_v43 }
  0x86   :  { %v65_v22 = vpop.trf.xlu0 }
  0x87   :  { %1065 = vmatmul.mubr.msk.bf16.gmra.mrb[12].mxu0 %vm82_vm1, %v65_v22 }
  0x88   :  { %1068 = vmatprep.mubr.msk.bf16.mxu0 %vm82_vm1, %v74_v11  ;;  %v81_v28 = vpop.trf.xlu1  ;;  %1131 = vmatpush3.bf16.msra.mxu0 %v1173_v49 }
  0x89   :  { %1132 = vmatprep.subr.bf16.mxu0 %v1231_v43 }
  0x8a   :  { %v380_v24 = vpop.trf.xlu0 }
  0x8b   :  { %1086 = vmatprep.mubr.msk.bf16.mxu1 %vm82_vm1, %v380_v24 }
  0x8c   :  { %v396_v30 = vpop.trf.xlu1  ;;  %1133 = vmatpush3.bf16.msra.mxu0 %v1174_v50 }
  0x8e   :  { %v381_v26 = vpop.trf.xlu0 }
  0x8f   :  { %1069 = vmatmul.mubr.msk.bf16.gmra.mrb[16].mxu0 %vm82_vm1, %v75_v13  ;;  %1087 = vmatmul.mubr.msk.bf16.vlgmr.msra.gmra.mrb[0].mxu1 %vm82_vm1, %v381_v26 }
  0x90   :  { %1072 = vmatprep.mubr.msk.bf16.mxu0 %vm82_vm1, %v76_v15  ;;  %v397_v33 = vpop.trf.xlu1  ;;  %1139 = vmatpush3.bf16.msra.mxu1 %v1175_v56 }
  0x91   :  { %1140 = vmatprep.subr.bf16.mxu1 %v1231_v43 }
  0x92   :  { %v382_v27 = vpop.trf.xlu0 }
  0x93   :  { %1090 = vmatprep.mubr.msk.bf16.mxu1 %vm82_vm1, %v382_v27 }
  0x94   :  { %v398_v35 = vpop.trf.xlu1  ;;  %1141 = vmatpush3.bf16.msra.mxu1 %v1176_v60 }
  0x95   :  { %1142 = vmatprep.subr.bf16.mxu1 %v1231_v43 }
  0x96   :  { %v383_v29 = vpop.trf.xlu0 }
  0x97   :  { %1073 = vmatmul.mubr.msk.bf16.gmra.mrb[20].mxu0 %vm82_vm1, %v77_v18  ;;  %1091 = vmatmul.mubr.msk.bf16.gmra.mrb[4].mxu1 %vm82_vm1, %v383_v29 }
  0x98   :  { %1076 = vmatprep.mubr.msk.bf16.mxu0 %vm82_vm1, %v78_v20  ;;  %v399_v37 = vpop.trf.xlu1  ;;  %1143 = vmatpush3.bf16.msra.mxu1 %v1177_v3 }
  0x99   :  { %1144 = vmatprep.subr.bf16.mxu1 %v1231_v43 }
  0x9a   :  { %v384_v31 = vpop.trf.xlu0 }
  0x9b   :  { %1094 = vmatprep.mubr.msk.bf16.mxu1 %vm82_vm1, %v384_v31 }
  0x9c   :  { %v400_v38 = vpop.trf.xlu1  ;;  %1145 = vmatpush3.bf16.msra.mxu1 %v1178_v14 }
  0x9d   :  { %1146 = vmatprep.subr.bf16.mxu1 %v1231_v43 }
  0x9e   :  { %v385_v32 = vpop.trf.xlu0 }
  0x9f   :  { %1077 = vmatmul.mubr.msk.bf16.gmra.mrb[24].mxu0 %vm82_vm1, %v79_v23  ;;  %1095 = vmatmul.mubr.msk.bf16.gmra.mrb[8].mxu1 %vm82_vm1, %v385_v32  ;;  %v1180_v32 = vld [vmem:[%s1492_s5 + $0x28] sm:$0xff]  }
  0xa0   :  { %1080 = vmatprep.mubr.msk.bf16.mxu0 %vm82_vm1, %v80_v25  ;;  %v401_v39 = vpop.trf.xlu1  ;;  %1147 = vmatpush3.bf16.msra.mxu1 %v1179_v21 }
  0xa1   :  { %1148 = vmatprep.subr.bf16.mxu1 %v1231_v43 }
  0xa2   :  { %v386_v34 = vpop.trf.xlu0 }
  0xa3   :  { %1098 = vmatprep.mubr.msk.bf16.mxu1 %vm82_vm1, %v386_v34 }
  0xa4   :  { %v402_v40 = vpop.trf.xlu1  ;;  %1149 = vmatpush3.bf16.msra.mxu1 %v1180_v32 }
  0xa5   :  { %1150 = vmatprep.subr.bf16.mxu1 %v1231_v43 }
  0xa6   :  { %v387_v36 = vpop.trf.xlu0 }
  0xa7   :  { %1081 = vmatmul.mubr.msk.bf16.gmra.mrb[28].mxu0 %vm82_vm1, %v81_v28  ;;  %1099 = vmatmul.mubr.msk.bf16.gmra.mrb[12].mxu1 %vm82_vm1, %v387_v36 }
  0xa8   :  { %1102 = vmatprep.mubr.msk.bf16.mxu1 %vm82_vm1, %v396_v30  ;;  %v403_v41 = vpop.trf.xlu1  ;;  %1134 = vmatprep.mubr.msk.bf16.mxu0 %vm1232_vm2, %v1231_v43 }
  0xaf   :  { %1103 = vmatmul.mubr.msk.bf16.gmra.mrb[16].mxu1 %vm82_vm1, %v397_v33 }
  0xb0   :  { %1106 = vmatprep.mubr.msk.bf16.mxu1 %vm82_vm1, %v398_v35 }
  0xb7   :  { %1107 = vmatmul.mubr.msk.bf16.gmra.mrb[20].mxu1 %vm82_vm1, %v399_v37 }
  0xb8   :  { %1110 = vmatprep.mubr.msk.bf16.mxu1 %vm82_vm1, %v400_v38 }
  0xbf   :  { %1111 = vmatmul.mubr.msk.bf16.gmra.mrb[24].mxu1 %vm82_vm1, %v401_v39  ;;  %v1181_v39 = vld [vmem:[%s1492_s5 + $0x30] sm:$0xff]  }
  0xc0   :  { %1114 = vmatprep.mubr.msk.bf16.mxu1 %vm82_vm1, %v402_v40  ;;  %1151 = vmatpush3.bf16.msra.mxu1 %v1181_v39 }
  0xc1   :  { %1152 = vmatprep.subr.bf16.mxu1 %v1231_v43 }
  0xc7   :  { %1115 = vmatmul.mubr.msk.bf16.gmra.mrb[28].mxu1 %vm82_vm1, %v403_v41 }
  0xc8   :  { %1154 = vmatprep.mubr.msk.bf16.mxu1 %vm1232_vm2, %v1231_v43 }
 0x142   :  { %v1054_v52 = vpop.f32.mrb[0].mxu0 }
 0x143   :  { %v169_v53 = vpop.f32.mrb[1].mxu0  ;;  %v178_v58 = vadd.f32 %v1054_v52, %v1360_v51  ;;  %v1182_v52 = vld [vmem:[%s1492_s5 + $0x38] sm:$0xff]  }
 0x144   :  { %v170_v54 = vadd.f32 %v1360_v51, %v169_v53  ;;  %v1055_v55 = vpop.f32.mrb[2].mxu0  ;;  %1153 = vmatpush3.bf16.msra.mxu1 %v1182_v52 }
 0x145   :  { %v172_v57 = vpop.f32.mrb[3].mxu0  ;;  %v181_v62 = vadd.f32 %v1055_v55, %v1360_v51  ;;  %v298_v0 = vmax.f32 %v178_v58, 0.0 }
 0x146   :  { %v173_v59 = vadd.f32 %v1360_v51, %v172_v57  ;;  %v296_v61 = vmax.f32 %v170_v54, 0.0 }
 0x147   :  { %v299_v5 = vmax.f32 %v181_v62, 0.0 }
 0x148   :  { %v297_v63 = vmax.f32 %v173_v59, 0.0 }
 0x14a   :  { %v328_v1 = vadd.f32 %v297_v63, %v296_v61  ;;  %v1058_v2 = vpop.f32.mrb[4].mxu0 }
 0x14b   :  { %v185_v4 = vpop.f32.mrb[5].mxu0  ;;  %v194_v10 = vadd.f32 %v1058_v2, %v1360_v51 }
 0x14c   :  { %v329_v6 = vadd.f32 %v328_v1, %v298_v0  ;;  %v186_v7 = vadd.f32 %v1360_v51, %v185_v4  ;;  %v1059_v8 = vpop.f32.mrb[6].mxu0 }
 0x14d   :  { %v188_v9 = vpop.f32.mrb[7].mxu0  ;;  %v197_v16 = vadd.f32 %v1059_v8, %v1360_v51  ;;  %v302_v18 = vmax.f32 %v194_v10, 0.0 }
 0x14e   :  { %v300_v11 = vmax.f32 %v186_v7, 0.0  ;;  %v330_v12 = vadd.f32 %v329_v6, %v299_v5  ;;  %v189_v13 = vadd.f32 %v1360_v51, %v188_v9 }
 0x14f   :  { %v303_v23 = vmax.f32 %v197_v16, 0.0 }
 0x150   :  { %v331_v15 = vadd.f32 %v330_v12, %v300_v11  ;;  %v301_v17 = vmax.f32 %v189_v13, 0.0 }
 0x152   :  { %v332_v19 = vadd.f32 %v331_v15, %v301_v17  ;;  %v1062_v20 = vpop.f32.mrb[8].mxu0 }
 0x153   :  { %v201_v22 = vpop.f32.mrb[9].mxu0  ;;  %v210_v28 = vadd.f32 %v1062_v20, %v1360_v51 }
 0x154   :  { %v333_v24 = vadd.f32 %v332_v19, %v302_v18  ;;  %v202_v25 = vadd.f32 %v1360_v51, %v201_v22  ;;  %v1063_v26 = vpop.f32.mrb[10].mxu0 }
 0x155   :  { %v204_v27 = vpop.f32.mrb[11].mxu0  ;;  %v213_v34 = vadd.f32 %v1063_v26, %v1360_v51  ;;  %v306_v36 = vmax.f32 %v210_v28, 0.0 }
 0x156   :  { %v304_v29 = vmax.f32 %v202_v25, 0.0  ;;  %v334_v30 = vadd.f32 %v333_v24, %v303_v23  ;;  %v205_v31 = vadd.f32 %v1360_v51, %v204_v27 }
 0x157   :  { %v307_v41 = vmax.f32 %v213_v34, 0.0 }
 0x158   :  { %v335_v33 = vadd.f32 %v334_v30, %v304_v29  ;;  %v305_v35 = vmax.f32 %v205_v31, 0.0 }
 0x15a   :  { %v336_v37 = vadd.f32 %v335_v33, %v305_v35  ;;  %v1066_v38 = vpop.f32.mrb[12].mxu0 }
 0x15b   :  { %v217_v40 = vpop.f32.mrb[13].mxu0  ;;  %v226_v47 = vadd.f32 %v1066_v38, %v1360_v51 }
 0x15c   :  { %v337_v42 = vadd.f32 %v336_v37, %v306_v36  ;;  %v218_v44 = vadd.f32 %v1360_v51, %v217_v40  ;;  %v1067_v45 = vpop.f32.mrb[14].mxu0 }
 0x15d   :  { %v220_v46 = vpop.f32.mrb[15].mxu0  ;;  %v229_v54 = vadd.f32 %v1067_v45, %v1360_v51  ;;  %v310_v56 = vmax.f32 %v226_v47, 0.0 }
 0x15e   :  { %v308_v48 = vmax.f32 %v218_v44, 0.0  ;;  %v338_v49 = vadd.f32 %v337_v42, %v307_v41  ;;  %v221_v50 = vadd.f32 %v1360_v51, %v220_v46 }
 0x15f   :  { %v311_v62 = vmax.f32 %v229_v54, 0.0 }
 0x160   :  { %v339_v53 = vadd.f32 %v338_v49, %v308_v48  ;;  %v309_v55 = vmax.f32 %v221_v50, 0.0 }
 0x162   :  { %v340_v57 = vadd.f32 %v339_v53, %v309_v55  ;;  %v1070_v58 = vpop.f32.mrb[16].mxu0  ;;  %v1088_v59 = vpop.f32.mrb[0].mxu1 }
 0x163   :  { %v233_v60 = vpop.f32.mrb[17].mxu0  ;;  %v486_v61 = vpop.f32.mrb[1].mxu1  ;;  %v242_v5 = vadd.f32 %v1070_v58, %v1360_v51  ;;  %v495_v9 = vadd.f32 %v1088_v59, %v1360_v51 }
 0x164   :  { %v341_v63 = vadd.f32 %v340_v57, %v310_v56  ;;  %v234_v0 = vadd.f32 %v1360_v51, %v233_v60  ;;  %v1071_v1 = vpop.f32.mrb[18].mxu0  ;;  %v1089_v2 = vpop.f32.mrb[2].mxu1  ;;  %v487_v3 = vadd.f32 %v1360_v51, %v486_v61 }
 0x165   :  { %v236_v43 = vpop.f32.mrb[19].mxu0  ;;  %v489_v4 = vpop.f32.mrb[3].mxu1  ;;  %v245_v12 = vadd.f32 %v1071_v1, %v1360_v51  ;;  %v498_v15 = vadd.f32 %v1089_v2, %v1360_v51  ;;  %v314_v17 = vmax.f32 %v242_v5, 0.0  ;;  %v615_v21 = vmax.f32 %v495_v9, 0.0 }
 0x166   :  { %v312_v6 = vmax.f32 %v234_v0, 0.0  ;;  %v342_v7 = vadd.f32 %v341_v63, %v311_v62  ;;  %v237_v8 = vadd.f32 %v1360_v51, %v236_v43  ;;  %v490_v10 = vadd.f32 %v1360_v51, %v489_v4 }
 0x167   :  { %v613_v14 = vmax.f32 %v487_v3, 0.0  ;;  %v315_v25 = vmax.f32 %v245_v12, 0.0  ;;  %v616_v31 = vmax.f32 %v498_v15, 0.0 }
 0x168   :  { %v343_v11 = vadd.f32 %v342_v7, %v312_v6  ;;  %v313_v13 = vmax.f32 %v237_v8, 0.0  ;;  %v614_v16 = vmax.f32 %v490_v10, 0.0 }
 0x16a   :  { %v344_v18 = vadd.f32 %v343_v11, %v313_v13  ;;  %v1074_v19 = vpop.f32.mrb[20].mxu0  ;;  %v1092_v20 = vpop.f32.mrb[4].mxu1  ;;  %v645_v22 = vadd.f32 %v614_v16, %v613_v14 }
 0x16b   :  { %v249_v23 = vpop.f32.mrb[21].mxu0  ;;  %v502_v24 = vpop.f32.mrb[5].mxu1  ;;  %v258_v35 = vadd.f32 %v1074_v19, %v1360_v51  ;;  %v511_v39 = vadd.f32 %v1092_v20, %v1360_v51 }
 0x16c   :  { %v345_v26 = vadd.f32 %v344_v18, %v314_v17  ;;  %v250_v27 = vadd.f32 %v1360_v51, %v249_v23  ;;  %v503_v28 = vadd.f32 %v1360_v51, %v502_v24  ;;  %v1075_v29 = vpop.f32.mrb[22].mxu0  ;;  %v1093_v30 = vpop.f32.mrb[6].mxu1  ;;  %v646_v32 = vadd.f32 %v645_v22, %v615_v21 }
 0x16d   :  { %v252_v33 = vpop.f32.mrb[23].mxu0  ;;  %v505_v34 = vpop.f32.mrb[7].mxu1  ;;  %v261_v45 = vadd.f32 %v1075_v29, %v1360_v51  ;;  %v514_v47 = vadd.f32 %v1093_v30, %v1360_v51  ;;  %v318_v53 = vmax.f32 %v258_v35, 0.0  ;;  %v619_v54 = vmax.f32 %v511_v39, 0.0 }
 0x16e   :  { %v316_v36 = vmax.f32 %v250_v27, 0.0  ;;  %v346_v37 = vadd.f32 %v345_v26, %v315_v25  ;;  %v617_v38 = vmax.f32 %v503_v28, 0.0  ;;  %v647_v40 = vadd.f32 %v646_v32, %v616_v31 }
 0x16f   :  { %v253_v41 = vadd.f32 %v1360_v51, %v252_v33  ;;  %v506_v42 = vadd.f32 %v1360_v51, %v505_v34  ;;  %v319_v63 = vmax.f32 %v261_v45, 0.0  ;;  %v620_v0 = vmax.f32 %v514_v47, 0.0 }
 0x170   :  { %v347_v44 = vadd.f32 %v346_v37, %v316_v36  ;;  %v648_v46 = vadd.f32 %v647_v40, %v617_v38 }
 0x171   :  { %v317_v48 = vmax.f32 %v253_v41, 0.0  ;;  %v618_v49 = vmax.f32 %v506_v42, 0.0 }
 0x172   :  { %v1078_v50 = vpop.f32.mrb[24].mxu0  ;;  %v1096_v52 = vpop.f32.mrb[8].mxu1 }
 0x173   :  { %v348_v55 = vadd.f32 %v347_v44, %v317_v48  ;;  %v649_v56 = vadd.f32 %v648_v46, %v618_v49  ;;  %v265_v57 = vpop.f32.mrb[25].mxu0  ;;  %v518_v58 = vpop.f32.mrb[9].mxu1  ;;  %v274_v4 = vadd.f32 %v1078_v50, %v1360_v51  ;;  %v527_v5 = vadd.f32 %v1096_v52, %v1360_v51 }
 0x174   :  { %v266_v59 = vadd.f32 %v1360_v51, %v265_v57  ;;  %v519_v60 = vadd.f32 %v1360_v51, %v518_v58  ;;  %v1079_v61 = vpop.f32.mrb[26].mxu0  ;;  %v1097_v62 = vpop.f32.mrb[10].mxu1 }
 0x175   :  { %v349_v1 = vadd.f32 %v348_v55, %v318_v53  ;;  %v650_v2 = vadd.f32 %v649_v56, %v619_v54  ;;  %v268_v3 = vpop.f32.mrb[27].mxu0  ;;  %v521_v43 = vpop.f32.mrb[11].mxu1  ;;  %v277_v12 = vadd.f32 %v1079_v61, %v1360_v51  ;;  %v530_v13 = vadd.f32 %v1097_v62, %v1360_v51 }
 0x176   :  { %v320_v6 = vmax.f32 %v266_v59, 0.0  ;;  %v621_v7 = vmax.f32 %v519_v60, 0.0  ;;  %v269_v10 = vadd.f32 %v1360_v51, %v268_v3  ;;  %v522_v11 = vadd.f32 %v1360_v51, %v521_v43 }
 0x177   :  { %v350_v8 = vadd.f32 %v349_v1, %v319_v63  ;;  %v651_v9 = vadd.f32 %v650_v2, %v620_v0  ;;  %v322_v20 = vmax.f32 %v274_v4, 0.0  ;;  %v623_v21 = vmax.f32 %v527_v5, 0.0 }
 0x178   :  { %v321_v16 = vmax.f32 %v269_v10, 0.0  ;;  %v622_v17 = vmax.f32 %v522_v11, 0.0  ;;  %v323_v30 = vmax.f32 %v277_v12, 0.0  ;;  %v624_v31 = vmax.f32 %v530_v13, 0.0 }
 0x179   :  { %v351_v14 = vadd.f32 %v350_v8, %v320_v6  ;;  %v652_v15 = vadd.f32 %v651_v9, %v621_v7 }
 0x17a   :  { %v1082_v18 = vpop.f32.mrb[28].mxu0  ;;  %v1100_v19 = vpop.f32.mrb[12].mxu1 }
 0x17b   :  { %v352_v22 = vadd.f32 %v351_v14, %v321_v16  ;;  %v653_v23 = vadd.f32 %v652_v15, %v622_v17  ;;  %v281_v24 = vpop.f32.mrb[29].mxu0  ;;  %v534_v25 = vpop.f32.mrb[13].mxu1  ;;  %v290_v36 = vadd.f32 %v1082_v18, %v1360_v51  ;;  %v543_v37 = vadd.f32 %v1100_v19, %v1360_v51 }
 0x17c   :  { %v282_v26 = vadd.f32 %v1360_v51, %v281_v24  ;;  %v535_v27 = vadd.f32 %v1360_v51, %v534_v25  ;;  %v1083_v28 = vpop.f32.mrb[30].mxu0  ;;  %v1101_v29 = vpop.f32.mrb[14].mxu1 }
 0x17d   :  { %v353_v32 = vadd.f32 %v352_v22, %v322_v20  ;;  %v654_v33 = vadd.f32 %v653_v23, %v623_v21  ;;  %v284_v34 = vpop.f32.mrb[31].mxu0  ;;  %v537_v35 = vpop.f32.mrb[15].mxu1  ;;  %v293_v45 = vadd.f32 %v1083_v28, %v1360_v51  ;;  %v546_v46 = vadd.f32 %v1101_v29, %v1360_v51 }
 0x17e   :  { %v324_v38 = vmax.f32 %v282_v26, 0.0  ;;  %v625_v39 = vmax.f32 %v535_v27, 0.0  ;;  %v285_v42 = vadd.f32 %v1360_v51, %v284_v34  ;;  %v538_v44 = vadd.f32 %v1360_v51, %v537_v35 }
 0x17f   :  { %v354_v40 = vadd.f32 %v353_v32, %v323_v30  ;;  %v655_v41 = vadd.f32 %v654_v33, %v624_v31  ;;  %v326_v53 = vmax.f32 %v290_v36, 0.0  ;;  %v627_v54 = vmax.f32 %v543_v37, 0.0 }
 0x180   :  { %v325_v49 = vmax.f32 %v285_v42, 0.0  ;;  %v626_v50 = vmax.f32 %v538_v44, 0.0  ;;  %v327_v60 = vmax.f32 %v293_v45, 0.0  ;;  %v628_v61 = vmax.f32 %v546_v46, 0.0 }
 0x181   :  { %v355_v47 = vadd.f32 %v354_v40, %v324_v38  ;;  %v656_v48 = vadd.f32 %v655_v41, %v625_v39 }
 0x182   :  { %v1104_v52 = vpop.f32.mrb[16].mxu1 }
 0x183   :  { %v356_v55 = vadd.f32 %v355_v47, %v325_v49  ;;  %v657_v56 = vadd.f32 %v656_v48, %v626_v50  ;;  %v550_v57 = vpop.f32.mrb[17].mxu1  ;;  %v559_v43 = vadd.f32 %v1104_v52, %v1360_v51 }
 0x184   :  { %v551_v58 = vadd.f32 %v1360_v51, %v550_v57  ;;  %v1105_v59 = vpop.f32.mrb[18].mxu1 }
 0x185   :  { %v357_v62 = vadd.f32 %v356_v55, %v326_v53  ;;  %v658_v63 = vadd.f32 %v657_v56, %v627_v54  ;;  %v553_v0 = vpop.f32.mrb[19].mxu1  ;;  %v562_v7 = vadd.f32 %v1105_v59, %v1360_v51  ;;  %v631_v9 = vmax.f32 %v559_v43, 0.0 }
 0x186   :  { %v629_v1 = vmax.f32 %v551_v58, 0.0  ;;  %v554_v2 = vadd.f32 %v1360_v51, %v553_v0 }
 0x187   :  { %v358_v3 = vadd.f32 %v357_v62, %v327_v60  ;;  %v659_v4 = vadd.f32 %v658_v63, %v628_v61  ;;  %v632_v14 = vmax.f32 %v562_v7, 0.0 }
 0x188   :  { %v630_v5 = vmax.f32 %v554_v2, 0.0 }
 0x189   :  { %v660_v6 = vadd.f32 %v659_v4, %v629_v1  ;;  %v359_v53 = vrot.slane %v358_v3, 4 }
 0x18a   :  { %v1108_v8 = vpop.f32.mrb[20].mxu1 }
 0x18b   :  { %v661_v10 = vadd.f32 %v660_v6, %v630_v5  ;;  %v566_v11 = vpop.f32.mrb[21].mxu1  ;;  %v575_v19 = vadd.f32 %v1108_v8, %v1360_v51  ;;  %v360_v59 = vadd.f32 %v359_v53, %v358_v3 }
 0x18c   :  { %v567_v12 = vadd.f32 %v1360_v51, %v566_v11  ;;  %v1109_v13 = vpop.f32.mrb[22].mxu1  ;;  %v682_v11 = vld [vmem:[#allocation2] sm:$0x3] }
 0x18d   :  { %v662_v15 = vadd.f32 %v661_v10, %v631_v9  ;;  %v569_v16 = vpop.f32.mrb[23].mxu1  ;;  %v578_v23 = vadd.f32 %v1109_v13, %v1360_v51  ;;  %v635_v25 = vmax.f32 %v575_v19, 0.0  ;;  %v361_v0 = vrot.slane %v360_v59, 2 }
 0x18e   :  { %v633_v17 = vmax.f32 %v567_v12, 0.0  ;;  %v570_v18 = vadd.f32 %v1360_v51, %v569_v16 }
 0x18f   :  { %v663_v20 = vadd.f32 %v662_v15, %v632_v14  ;;  %v636_v30 = vmax.f32 %v578_v23, 0.0  ;;  %v362_v43 = vadd.f32 %v361_v0, %v360_v59  ;;  %v980_v15 = vld [vmem:[%s1491_s4] ss:$0 sm:$0xff] }
 0x190   :  { %v634_v21 = vmax.f32 %v570_v18, 0.0 }
 0x191   :  { %v664_v22 = vadd.f32 %v663_v20, %v633_v17  ;;  %v363_v6 = vrot.slane %v362_v43, 1 }
 0x192   :  { %v1112_v24 = vpop.f32.mrb[24].mxu1 }
 0x193   :  { %v665_v26 = vadd.f32 %v664_v22, %v634_v21  ;;  %v582_v27 = vpop.f32.mrb[25].mxu1  ;;  %v591_v35 = vadd.f32 %v1112_v24, %v1360_v51  ;;  %v364_v9 = vadd.f32 %v363_v6, %v362_v43 }
 0x194   :  { %v583_v28 = vadd.f32 %v1360_v51, %v582_v27  ;;  %v1113_v29 = vpop.f32.mrb[26].mxu1 }
 0x195   :  { %v666_v31 = vadd.f32 %v665_v26, %v635_v25  ;;  %v585_v32 = vpop.f32.mrb[27].mxu1  ;;  %v594_v39 = vadd.f32 %v1113_v29, %v1360_v51  ;;  %v639_v41 = vmax.f32 %v591_v35, 0.0 }
 0x196   :  { %v637_v33 = vmax.f32 %v583_v28, 0.0  ;;  %v586_v34 = vadd.f32 %v1360_v51, %v585_v32 }
 0x197   :  { %v667_v36 = vadd.f32 %v666_v31, %v636_v30  ;;  %v640_v47 = vmax.f32 %v594_v39, 0.0 }
 0x198   :  { %v638_v37 = vmax.f32 %v586_v34, 0.0 }
 0x199   :  { %v668_v38 = vadd.f32 %v667_v36, %v637_v33 }
 0x19a   :  { %v1116_v40 = vpop.f32.mrb[28].mxu1 }
 0x19b   :  { %v669_v42 = vadd.f32 %v668_v38, %v638_v37  ;;  %v598_v44 = vpop.f32.mrb[29].mxu1  ;;  %v607_v54 = vadd.f32 %v1116_v40, %v1360_v51 }
 0x19c   :  { %v599_v45 = vadd.f32 %v1360_v51, %v598_v44  ;;  %v1117_v46 = vpop.f32.mrb[30].mxu1 }
 0x19d   :  { %v670_v48 = vadd.f32 %v669_v42, %v639_v41  ;;  %v601_v49 = vpop.f32.mrb[31].mxu1  ;;  %v610_v58 = vadd.f32 %v1117_v46, %v1360_v51  ;;  %v643_v60 = vmax.f32 %v607_v54, 0.0 }
 0x19e   :  { %v641_v50 = vmax.f32 %v599_v45, 0.0  ;;  %v602_v52 = vadd.f32 %v1360_v51, %v601_v49 }
 0x19f   :  { %v671_v55 = vadd.f32 %v670_v48, %v640_v47  ;;  %v644_v62 = vmax.f32 %v610_v58, 0.0 }
 0x1a0   :  { %v642_v56 = vmax.f32 %v602_v52, 0.0 }
 0x1a1   :  { %v672_v57 = vadd.f32 %v671_v55, %v641_v50 }
 0x1a3   :  { %v673_v61 = vadd.f32 %v672_v57, %v642_v56 }
 0x1a5   :  { %v674_v63 = vadd.f32 %v673_v61, %v643_v60 }
 0x1a7   :  { %v675_v1 = vadd.f32 %v674_v63, %v644_v62 }
 0x1a9   :  { %v676_v2 = vrot.slane %v675_v1, 4 }
 0x1ab   :  { %v677_v4 = vadd.f32 %v676_v2, %v675_v1 }
 0x1ad   :  { %v678_v5 = vrot.slane %v677_v4, 2 }
 0x1af   :  { %v679_v7 = vadd.f32 %v678_v5, %v677_v4 }
 0x1b1   :  { %v680_v8 = vrot.slane %v679_v7, 1 }
 0x1b3   :  { %v681_v10 = vadd.f32 %v680_v8, %v679_v7 }
 0x1b5   :  { %v684_v12 = vsel %vm683_vm3, %v364_v9, %v681_v10 }
 0x1b6   :  { %v685_v51 = vadd.f32 %v684_v12, %v682_v11 }
 0x1b8   :  { %686 = vst [vmem:[#allocation2] sm:$0x3] %v685_v51 }
 0x1bf   :  { %v690_v3 = vld [vmem:[#allocation2] sm:$0x3] }
 0x1c0   :  { %v691_v13 = vmul.f32 0.00390625, %v690_v3 }
 0x1c2   :  { %v692_v14 = vpack.c.bf16 %v691_v13, %v691_v13 }
 0x1c4   :  { %1135 = vmatmul.mubr.bf16.vlgmr.msra.gmra.mrb[32].mxu0 %v692_v14 }
 0x297   :  { %v798_v16 = vpop.f32.mrb[32].mxu0 }
 0x298   :  { %v799_v17 = vadd.f32 %v980_v15, %v798_v16  ;;  %v1136_v18 = vpop.f32.mrb[33].mxu0 }
 0x299   :  { %v801_v19 = vpop.f32.mrb[34].mxu0 }
 0x29a   :  { %v804_v20 = vpack.c.bf16 %v799_v17, %v799_v17  ;;  %916 = vst [vmem:[#allocation3] sm:$0x3] %v799_v17  ;;  %v1137_v21 = vpop.f32.mrb[35].mxu0 }
 0x29c   :  { %1155 = vmatmul.mubr.bf16.vlgmr.msra.gmra.mrb[32].mxu1 %v804_v20 }
 0x29d   :  { %1194 = shalt.err (!%p1191_p4)
}
 0x29e   :  { %s1195_s22 = scalar_lea.hbm %s1494_s7, 32 }
 0x29f   :  { %p1196_p5 = scmp.ne.s32.totalorder %s1494_s7, %s1195_s22  ;;  %p1199_p6 = scmp.lt.u32.totalorder %s1195_s22, %s1494_s7 }
 0x2a1   :  { %p1201_p7 = pnand %p1199_p6, %p1196_p5 }
 0x2a3   :  { %1204 = shalt.err (!%p1201_p7)
}
 0x2a4   :  { %927 = dma.vmem_to_hbm [thread:$0]  %s925_s19, 32, %s1494_s7, [#allocation4]   ;;  %v989_v22 = vld [vmem:[%s1493_s6] ss:$0 sm:$0xff] }
 0x2a5   :  { %s1234_s2 = smov [#allocation5]  }
 0x2a6   :  { %s934_s30 = sshll.u32 %s1234_s2, 4  ;;  %s935_s30 = int_to_ptr.vmem [resolvable:$true] %s934_s30 }
 0x2a7   :  { %s1205_s9 = scalar_lea.vmem %s935_s30, 32  ;;  %p1210_p9 = scmp.lt.s32.totalorder %s935_s30, %s935_s30 }
 0x2a8   :  { %p1206_p8 = scmp.ne.s32.totalorder %s935_s30, %s1205_s9  ;;  %p1211_p10 = scmp.lt.s32.totalorder %s1205_s9, %s1205_s9 }
 0x2aa   :  { %p1212_p11 = por %p1211_p10, %p1210_p9 }
 0x2ac   :  { %p1213_p12 = pnand %p1212_p11, %p1206_p8 }
 0x36f   :  { %v910_v23 = vpop.f32.mrb[32].mxu1 }
 0x370   :  { %v911_v24 = vadd.f32 %v989_v22, %v910_v23  ;;  %v1156_v25 = vpop.f32.mrb[33].mxu1 }
 0x371   :  { %v913_v26 = vpop.f32.mrb[34].mxu1 }
 0x372   :  { %917 = vst [vmem:[#allocation5] sm:$0x3] %v911_v24  ;;  %v1157_v27 = vpop.f32.mrb[35].mxu1 }
 0x373   :  { %1216 = shalt.err (!%p1213_p12)
}
 0x374   :  { %s1217_s6 = scalar_lea.hbm %s1495_s8, 32 }
 0x375   :  { %p1218_p13 = scmp.ne.s32.totalorder %s1495_s8, %s1217_s6  ;;  %p1221_p0 = scmp.lt.u32.totalorder %s1217_s6, %s1495_s8 }
 0x377   :  { %p1223_p1 = pnand %p1221_p0, %p1218_p13 }
 0x379   :  { %1226 = shalt.err (!%p1223_p1)
}
 0x37a   :  { %937 = dma.vmem_to_hbm [thread:$0]  %s935_s30, 32, %s1495_s8, [#allocation6]  }
 0x37b   :  { %1227 = dma.done.wait [#allocation4], 32  }
 0x37c   :  { %1228 = vsyncadd [#allocation4], 4294967264 }
 0x37d   :  { %1229 = dma.done.wait [#allocation6], 32  }
 0x37e   :  { %1230 = vsyncadd [#allocation6], 4294967264 }
 0x37f   :  { %944 = vsyncpa [#allocation4], 1 }
 0x380   :  { %945 = vsyncpa [#allocation6], 1 }

</bundles_post_ra>
